<compile_context>
chip_gen: v6e
topology: v6e:2x2x1
jax: 0.10.0
libtpu: 0.0.40
codegen_flags: <defaults>
</compile_context>

<pallas_src>
import functools

import jax
import jax.numpy as jnp
from jax.experimental import pallas as pl
from jax.experimental.pallas import tpu as pltpu

LP = 128  # lane-dense padded classifier width


def _ner_sa_kernel(x_ref, mb_ref, wqkv_ref, bqkv_ref, wc_ref, bc_ref, o_ref):
    # x_ref:   (Bb, S, H)  bf16      mb_ref:  (Bb, 1, S)  f32 mask bias (0 / -1e9)
    # wqkv_ref:(H, 3H)     bf16      bqkv_ref:(1, 3H)     f32 (scale folded into Q part)
    # wc_ref:  (H, LP)     bf16      bc_ref:  (1, LP)     f32
    # o_ref:   (Bb, S, LP) bf16
    bb, s, h = x_ref.shape

    x2 = x_ref[...].reshape(bb * s, h)                     # bf16, no cast needed

    # Fused Q/K/V projection: one (Bb*S, H) x (H, 3H) MXU matmul, f32 accumulation.
    qkv = jnp.dot(x2, wqkv_ref[...],
                  preferred_element_type=jnp.float32) + bqkv_ref[...]
    qkv = qkv.reshape(bb, s, 3 * h)
    q = qkv[:, :, :h].astype(jnp.bfloat16)                 # already scaled by 1/sqrt(H)
    k = qkv[:, :, h:2 * h].astype(jnp.bfloat16)
    v = qkv[:, :, 2 * h:].astype(jnp.bfloat16)

    # Attention scores: contraction over the hidden dim (no explicit K^T),
    # additive mask bias precomputed in the wrapper.
    scores = jnp.einsum('bqd,bkd->bqk', q, k,
                        preferred_element_type=jnp.float32)
    scores = scores + mb_ref[...]                          # (Bb,1,S) broadcast

    # Numerically-stable softmax along keys; reciprocal on the EUP.
    smax = scores.max(axis=-1, keepdims=True)
    p = jnp.exp(scores - smax)
    p = p * pl.reciprocal(p.sum(axis=-1, keepdims=True), approx=True)

    ctx = jnp.einsum('bqk,bkd->bqd', p.astype(jnp.bfloat16), v,
                     preferred_element_type=jnp.float32)   # (Bb, S, H) f32

    # Dropout is identity at inference.  Lane-dense (padded) classifier matmul.
    ctx2 = ctx.reshape(bb * s, h).astype(jnp.bfloat16)
    logits = jnp.dot(ctx2, wc_ref[...],
                     preferred_element_type=jnp.float32) + bc_ref[...]
    o_ref[...] = logits.reshape(bb, s, LP).astype(o_ref.dtype)


def _batch_per_block(batch, seq, hidden):
    """Pick the per-step batch block so each TensorCore sees >=4 grid steps
    (enables Pallas double-buffering) and the f32 intermediates fit VMEM."""
    try:
        kind = jax.devices()[0].device_kind.lower()
    except Exception:  # pragma: no cover - defensive
        kind = ""
    n_cores = 2 if "v7" in kind else 1          # v7x: 2 TensorCores / chip
    target_steps = 4 * n_cores                  # >=4 pipelined steps per core

    bb_cap = max(1, batch // target_steps)
    # VMEM cap on the per-step f32 intermediates (scores + qkv + ctx).
    per_b = seq * seq * 4 + seq * 3 * hidden * 4 + seq * hidden * 4
    vmem_cap = max(1, (8 << 20) // max(per_b, 1))
    bb_cap = max(1, min(bb_cap, vmem_cap))

    bb = 1
    for d in range(1, bb_cap + 1):              # largest divisor of batch <= cap
        if batch % d == 0:
            bb = d
    return bb


def _vmem_budget_bytes(bb, seq, hidden):
    """Explicit scoped-VMEM budget: double-buffered I/O + weights + live f32
    intermediates + slop, clamped to stay legal on every generation."""
    in_blk = bb * seq * hidden * 2               # bf16 activations
    mask_blk = bb * seq * 4
    out_blk = bb * seq * LP * 2                  # bf16 padded logits
    weights = hidden * 3 * hidden * 2 + 3 * hidden * 4 + hidden * LP * 2 + LP * 4
    inter = bb * seq * (3 * hidden) * 4 + bb * seq * seq * 4 \
        + bb * seq * hidden * 4 + bb * seq * LP * 4
    need = 2 * (in_blk + mask_blk + out_blk) + 2 * weights + inter + (4 << 20)
    return int(min(max(need, 32 << 20), 64 << 20))


def prepare_params(params, hidden, num_labels):
    """One-time weight prep (hoisted out of the per-call path):
    fuse QKV, fold 1/sqrt(H) into the Q columns, pad the classifier to 128 lanes."""
    wq, bq, wk, bk, wv, bv, wc, bc = params
    scale = jnp.float32(1.0 / (hidden ** 0.5))
    wqkv = jnp.concatenate([wq * scale, wk, wv], axis=1).astype(jnp.bfloat16)
    bqkv = jnp.concatenate([bq * scale, bk, bv]).reshape(1, 3 * hidden).astype(jnp.float32)
    wc_pad = (jnp.zeros((hidden, LP), jnp.float32)
              .at[:, :num_labels].set(wc).astype(jnp.bfloat16))
    bc_pad = jnp.zeros((1, LP), jnp.float32).at[:, :num_labels].set(bc.reshape(1, -1))
    return wqkv, bqkv, wc_pad, bc_pad


def ner_sa_forward(hidden_states, attention_mask, prepared, num_labels):
    """hidden_states: (B, S, H), attention_mask: (B, S) -> logits (B, S, L) f32."""
    B, S, H = hidden_states.shape
    L = num_labels
    wqkv, bqkv, wc_pad, bc_pad = prepared

    x_bf16 = hidden_states.astype(jnp.bfloat16)
    mask_bias = ((1.0 - attention_mask.astype(jnp.float32))
                 * jnp.float32(-1e9)).reshape(B, 1, S)

    bb = _batch_per_block(B, S, H)
    nblk = B // bb

    # Advisory cost hint for the XLA scheduler around the custom call.
    flops = 2 * B * S * (3 * H * H + 2 * S * H + H * LP)
    transcendentals = B * S * S
    bytes_accessed = (B * S * H * 2 + B * S * 4 + H * 3 * H * 2 + 3 * H * 4
                      + H * LP * 2 + LP * 4 + B * S * LP * 2)

    grid_spec = pltpu.PrefetchScalarGridSpec(
        num_scalar_prefetch=0,
        grid=(nblk,),
        in_specs=[
            pl.BlockSpec((bb, S, H), lambda b: (b, 0, 0)),   # activations (bf16)
            pl.BlockSpec((bb, 1, S), lambda b: (b, 0, 0)),   # mask bias
            pl.BlockSpec((H, 3 * H), lambda b: (0, 0)),      # fused Wqkv (bf16)
            pl.BlockSpec((1, 3 * H), lambda b: (0, 0)),      # fused bqkv
            pl.BlockSpec((H, LP), lambda b: (0, 0)),         # Wc padded (bf16)
            pl.BlockSpec((1, LP), lambda b: (0, 0)),         # bc padded
        ],
        out_specs=pl.BlockSpec((bb, S, LP), lambda b: (b, 0, 0)),
    )

    logits_pad = pl.pallas_call(
        _ner_sa_kernel,
        out_shape=jax.ShapeDtypeStruct((B, S, LP), jnp.bfloat16),
        grid_spec=grid_spec,
        compiler_params=pltpu.CompilerParams(
            dimension_semantics=("parallel",),
            vmem_limit_bytes=_vmem_budget_bytes(bb, S, H)),
        cost_estimate=pl.CostEstimate(flops=flops,
                                      transcendentals=transcendentals,
                                      bytes_accessed=bytes_accessed),
    )(x_bf16, mask_bias, wqkv, bqkv, wc_pad, bc_pad)

    # Slice the padded lanes and restore f32 for the (loss, logits) interface.
    return logits_pad[:, :, :L].astype(jnp.float32)


def cross_entropy_loss(logits, labels, num_labels):
    """Plain-JAX glue matching nn.CrossEntropyLoss on flattened logits/labels."""
    flat_logits = logits.reshape(-1, num_labels)
    flat_labels = labels.reshape(-1)
    logz = jax.nn.logsumexp(flat_logits, axis=-1)
    picked = jnp.take_along_axis(flat_logits, flat_labels[:, None], axis=-1)[:, 0]
    return jnp.mean(logz - picked)


def init_params(key, hidden, num_labels):
    ks = jax.random.split(key, 4)
    s = 0.02
    wq = jax.random.normal(ks[0], (hidden, hidden), jnp.float32) * s
    bq = jnp.zeros((hidden,), jnp.float32)
    wk = jax.random.normal(ks[1], (hidden, hidden), jnp.float32) * s
    bk = jnp.zeros((hidden,), jnp.float32)
    wv = jax.random.normal(ks[2], (hidden, hidden), jnp.float32) * s
    bv = jnp.zeros((hidden,), jnp.float32)
    wc = jax.random.normal(ks[3], (hidden, num_labels), jnp.float32) * s
    bc = jnp.zeros((num_labels,), jnp.float32)
    return (wq, bq, wk, bk, wv, bv, wc, bc)


if __name__ == "__main__":
    B, S, H, L, VOCAB = 2, 128, 128, 16, 512

    key = jax.random.PRNGKey(0)
    k_ids, k_emb, k_par = jax.random.split(key, 3)

    # TODO(synk): pretrained BERT encoder replaced by a deterministic embedding
    # lookup producing last_hidden_state; the transformer stack itself is not
    # part of this kernel.
    input_ids = jax.random.randint(k_ids, (B, S), 0, VOCAB)
    embedding_table = jax.random.normal(k_emb, (VOCAB, H), jnp.float32) * 0.02
    last_hidden_state = embedding_table[input_ids]              # (B, S, H)

    attention_mask = jnp.ones((B, S), jnp.float32)
    params = init_params(k_par, H, L)
    prepared = prepare_params(params, H, L)     # hoisted one-time weight prep

    logits = ner_sa_forward(last_hidden_state, attention_mask, prepared, L)
    logits = jax.block_until_ready(logits)
    assert logits.shape == (B, S, L)
    assert bool(jnp.all(jnp.isfinite(logits)))

    # optional labels path (plain-JAX glue, mirrors the (loss, logits) return)
    labels = jax.random.randint(jax.random.PRNGKey(1), (B, S), 0, L)
    loss = jax.block_until_ready(cross_entropy_loss(logits, labels, L))
    assert jnp.isfinite(loss)

    print("KERNEL_OK")
</pallas_src>

<mosaic_0001>
module attributes {stable_mosaic.version = 11 : i64} {
  func.func @_ner_sa_kernel(%arg0: i32, %arg1: memref<1x128x128xbf16, #tpu.memory_space<vmem>>, %arg2: memref<1x1x128xf32, #tpu.memory_space<vmem>>, %arg3: memref<128x384xbf16, #tpu.memory_space<vmem>>, %arg4: memref<1x384xf32, #tpu.memory_space<vmem>>, %arg5: memref<128x128xbf16, #tpu.memory_space<vmem>>, %arg6: memref<1x128xf32, #tpu.memory_space<vmem>>, %arg7: memref<1x128x128xbf16, #tpu.memory_space<vmem>>) attributes {dimension_semantics = [#tpu.dimension_semantics<parallel>], iteration_bounds = array<i64: 2>, scalar_prefetch = 0 : i64, scratch_operands = 0 : i64, tpu.core_type = #tpu.core_type<tc>, window_params = [{transform_indices = @transform_0, window_bounds = array<i64: 1, 128, 128>}, {transform_indices = @transform_1, window_bounds = array<i64: 1, 1, 128>}, {pipeline_mode = #tpu.pipeline_mode<synchronous>, transform_indices = @transform_2, window_bounds = array<i64: 128, 384>}, {pipeline_mode = #tpu.pipeline_mode<synchronous>, transform_indices = @transform_3, window_bounds = array<i64: 1, 384>}, {pipeline_mode = #tpu.pipeline_mode<synchronous>, transform_indices = @transform_4, window_bounds = array<i64: 128, 128>}, {pipeline_mode = #tpu.pipeline_mode<synchronous>, transform_indices = @transform_5, window_bounds = array<i64: 1, 128>}, {transform_indices = @transform_6, window_bounds = array<i64: 1, 128, 128>}]} {
    %c0 = arith.constant 0 : index
    %c0_0 = arith.constant 0 : index
    %c0_1 = arith.constant 0 : index
    %0 = vector.load %arg1[%c0, %c0_0, %c0_1] : memref<1x128x128xbf16, #tpu.memory_space<vmem>>, vector<1x128x128xbf16>
    %1 = vector.shape_cast %0 : vector<1x128x128xbf16> to vector<128x128xbf16>
    %c0_2 = arith.constant 0 : index
    %c0_3 = arith.constant 0 : index
    %2 = vector.load %arg3[%c0_2, %c0_3] : memref<128x384xbf16, #tpu.memory_space<vmem>>, vector<128x384xbf16>
    %cst = arith.constant dense<0.000000e+00> : vector<128x384xf32>
    %3 = tpu.matmul %1, %2, %cst {dimension_numbers = #tpu.dot_dimension_numbers<[1], [0], [0], [1], [0, 0, 1, 1], [], []>} : vector<128x128xbf16>, vector<128x384xbf16>, vector<128x384xf32> -> vector<128x384xf32>
    %c0_4 = arith.constant 0 : index
    %c0_5 = arith.constant 0 : index
    %4 = vector.load %arg4[%c0_4, %c0_5] : memref<1x384xf32, #tpu.memory_space<vmem>>, vector<1x384xf32>
    %5 = vector.broadcast %4 : vector<1x384xf32> to vector<128x384xf32>
    %6 = arith.addf %3, %5 : vector<128x384xf32>
    %7 = vector.shape_cast %6 : vector<128x384xf32> to vector<1x128x384xf32>
    %8 = vector.extract_strided_slice %7 {offsets = [0, 0, 0], sizes = [1, 128, 128], strides = [1, 1, 1]} : vector<1x128x384xf32> to vector<1x128x128xf32>
    %9 = arith.truncf %8 : vector<1x128x128xf32> to vector<1x128x128xbf16>
    %10 = vector.extract_strided_slice %7 {offsets = [0, 0, 128], sizes = [1, 128, 128], strides = [1, 1, 1]} : vector<1x128x384xf32> to vector<1x128x128xf32>
    %11 = arith.truncf %10 : vector<1x128x128xf32> to vector<1x128x128xbf16>
    %12 = vector.extract_strided_slice %7 {offsets = [0, 0, 256], sizes = [1, 128, 128], strides = [1, 1, 1]} : vector<1x128x384xf32> to vector<1x128x128xf32>
    %13 = arith.truncf %12 : vector<1x128x128xf32> to vector<1x128x128xbf16>
    "tpu.trace_start"() <{level = 10 : i32, message = "bqd,bkd->bqk"}> : () -> ()
    %cst_6 = arith.constant dense<0.000000e+00> : vector<1x128x128xf32>
    %14 = tpu.matmul %9, %11, %cst_6 {dimension_numbers = #tpu.dot_dimension_numbers<[2], [2], [1], [1], [0, 0, 0, 1, 1, 1], [0], [0]>} : vector<1x128x128xbf16>, vector<1x128x128xbf16>, vector<1x128x128xf32> -> vector<1x128x128xf32>
    "tpu.trace_stop"() : () -> ()
    %c0_7 = arith.constant 0 : index
    %c0_8 = arith.constant 0 : index
    %c0_9 = arith.constant 0 : index
    %15 = vector.load %arg2[%c0_7, %c0_8, %c0_9] : memref<1x1x128xf32, #tpu.memory_space<vmem>>, vector<1x1x128xf32>
    %16 = vector.broadcast %15 : vector<1x1x128xf32> to vector<1x128x128xf32>
    %17 = arith.addf %14, %16 : vector<1x128x128xf32>
    %cst_10 = arith.constant dense<0xFF800000> : vector<1x128xf32>
    %18 = vector.multi_reduction <maximumf>, %17, %cst_10 [2] : vector<1x128x128xf32> to vector<1x128xf32>
    %19 = vector.shape_cast %18 : vector<1x128xf32> to vector<1x128x1xf32>
    %20 = vector.broadcast %19 : vector<1x128x1xf32> to vector<1x128x128xf32>
    %21 = arith.subf %17, %20 : vector<1x128x128xf32>
    %22 = math.exp %21 : vector<1x128x128xf32>
    %cst_11 = arith.constant dense<0.000000e+00> : vector<1x128xf32>
    %23 = vector.multi_reduction <add>, %22, %cst_11 [2] : vector<1x128x128xf32> to vector<1x128xf32>
    %24 = vector.shape_cast %23 : vector<1x128xf32> to vector<1x128x1xf32>
    %25 = tpu.reciprocal %24 {approx = true} : vector<1x128x1xf32> -> vector<1x128x1xf32>
    %26 = vector.broadcast %25 : vector<1x128x1xf32> to vector<1x128x128xf32>
    %27 = arith.mulf %22, %26 : vector<1x128x128xf32>
    %28 = arith.truncf %27 : vector<1x128x128xf32> to vector<1x128x128xbf16>
    "tpu.trace_start"() <{level = 10 : i32, message = "bqk,bkd->bqd"}> : () -> ()
    %cst_12 = arith.constant dense<0.000000e+00> : vector<1x128x128xf32>
    %29 = tpu.matmul %28, %13, %cst_12 {dimension_numbers = #tpu.dot_dimension_numbers<[2], [1], [1], [2], [0, 0, 0, 1, 1, 2], [0], [0]>} : vector<1x128x128xbf16>, vector<1x128x128xbf16>, vector<1x128x128xf32> -> vector<1x128x128xf32>
    "tpu.trace_stop"() : () -> ()
    %30 = vector.shape_cast %29 : vector<1x128x128xf32> to vector<128x128xf32>
    %31 = arith.truncf %30 : vector<128x128xf32> to vector<128x128xbf16>
    %c0_13 = arith.constant 0 : index
    %c0_14 = arith.constant 0 : index
    %32 = vector.load %arg5[%c0_13, %c0_14] : memref<128x128xbf16, #tpu.memory_space<vmem>>, vector<128x128xbf16>
    %cst_15 = arith.constant dense<0.000000e+00> : vector<128x128xf32>
    %33 = tpu.matmul %31, %32, %cst_15 {dimension_numbers = #tpu.dot_dimension_numbers<[1], [0], [0], [1], [0, 0, 1, 1], [], []>} : vector<128x128xbf16>, vector<128x128xbf16>, vector<128x128xf32> -> vector<128x128xf32>
    %c0_16 = arith.constant 0 : index
    %c0_17 = arith.constant 0 : index
    %34 = vector.load %arg6[%c0_16, %c0_17] : memref<1x128xf32, #tpu.memory_space<vmem>>, vector<1x128xf32>
    %35 = vector.broadcast %34 : vector<1x128xf32> to vector<128x128xf32>
    %36 = arith.addf %33, %35 : vector<128x128xf32>
    %37 = vector.shape_cast %36 : vector<128x128xf32> to vector<1x128x128xf32>
    %38 = arith.truncf %37 : vector<1x128x128xf32> to vector<1x128x128xbf16>
    %c0_18 = arith.constant 0 : index
    %c0_19 = arith.constant 0 : index
    %c0_20 = arith.constant 0 : index
    %39 = vector.load %arg7[%c0_18, %c0_19, %c0_20] : memref<1x128x128xbf16, #tpu.memory_space<vmem>>, vector<1x128x128xbf16>
    tpu.vector_store %arg7[%c0_18, %c0_19, %c0_20], %38 {strides = array<i32>} : memref<1x128x128xbf16, #tpu.memory_space<vmem>>, vector<1x128x128xbf16>,
    return
  }
  func.func @transform_0(%arg0: i32) -> (i32, i32, i32) {
    %c0_i32 = arith.constant 0 : i32
    %c0_i32_0 = arith.constant 0 : i32
    %c0_i32_1 = arith.constant 0 : i32
    return %arg0, %c0_i32, %c0_i32_0 : i32, i32, i32
  }
  func.func @transform_1(%arg0: i32) -> (i32, i32, i32) {
    %c0_i32 = arith.constant 0 : i32
    %c0_i32_0 = arith.constant 0 : i32
    %c0_i32_1 = arith.constant 0 : i32
    return %arg0, %c0_i32, %c0_i32_0 : i32, i32, i32
  }
  func.func @transform_2(%arg0: i32) -> (i32, i32) {
    %c0_i32 = arith.constant 0 : i32
    %c0_i32_0 = arith.constant 0 : i32
    %c0_i32_1 = arith.constant 0 : i32
    return %c0_i32, %c0_i32_0 : i32, i32
  }
  func.func @transform_3(%arg0: i32) -> (i32, i32) {
    %c0_i32 = arith.constant 0 : i32
    %c0_i32_0 = arith.constant 0 : i32
    %c0_i32_1 = arith.constant 0 : i32
    return %c0_i32, %c0_i32_0 : i32, i32
  }
  func.func @transform_4(%arg0: i32) -> (i32, i32) {
    %c0_i32 = arith.constant 0 : i32
    %c0_i32_0 = arith.constant 0 : i32
    %c0_i32_1 = arith.constant 0 : i32
    return %c0_i32, %c0_i32_0 : i32, i32
  }
  func.func @transform_5(%arg0: i32) -> (i32, i32) {
    %c0_i32 = arith.constant 0 : i32
    %c0_i32_0 = arith.constant 0 : i32
    %c0_i32_1 = arith.constant 0 : i32
    return %c0_i32, %c0_i32_0 : i32, i32
  }
  func.func @transform_6(%arg0: i32) -> (i32, i32, i32) {
    %c0_i32 = arith.constant 0 : i32
    %c0_i32_0 = arith.constant 0 : i32
    %c0_i32_1 = arith.constant 0 : i32
    return %arg0, %c0_i32, %c0_i32_0 : i32, i32, i32
  }
}

</mosaic_0001>

<bundles_post_ra>
// kernel: tpu_custom_call.1
= control target key start
LH: loop header
LB: loop body
LE: loop exit
PB: predicated region body
PF: predicated region fallthrough
CT: control target
= control target key end

     0   :  { %s2826_s0 = inlined_call_operand.hbm [shape: bf16[2,128,128], index: 0, kind: input, shape index: {}]   ;;  %s2827_s1 = inlined_call_operand.hbm [shape: f32[2,1,128], index: 1, kind: input, shape index: {}]   ;;  %s2828_s2 = inlined_call_operand.hbm [shape: bf16[128,384], index: 2, kind: input, shape index: {}]   ;;  %s2829_s3 = inlined_call_operand.vmem [shape: f32[1,384], index: 3, kind: input, shape index: {}]   ;;  %s2830_s4 = inlined_call_operand.hbm [shape: bf16[128,128], index: 4, kind: input, shape index: {}]   ;;  %s2831_s5 = inlined_call_operand.vmem [shape: f32[1,128], index: 5, kind: input, shape index: {}]   ;;  %s2832_s6 = inlined_call_operand.hbm [shape: bf16[2,128,128], index: 6, kind: output, shape index: {}]  }
   0x1   :  { %2839 = sst [smem:[#allocation18_spill]] %s2826_s0 }
   0x2   :  { %2840 = sst [smem:[#allocation19_spill]] %s2828_s2 }
   0x3   :  { %2841 = sst [smem:[#allocation20_spill]] %s2830_s4 }
   0x4   :  { %11 = vsyncpa [#allocation3], 0 }
   0x5   :  { %13 = vsyncpa [#allocation3 + $0x1], 0 }
   0x6   :  { %14 = vsyncpa [#allocation6], 0 }
   0x7   :  { %16 = vsyncpa [#allocation6 + $0x1], 0 }
   0x8   :  { %17 = vsyncpa [#allocation9], 0 }
   0x9   :  { %18 = vsyncpa [#allocation4], 0 }
   0xa   :  { %20 = vsyncpa [#allocation4 + $0x1], 0  ;;  %s2302_s21 = smov 0   ;;  %s2304_s22 = smov 0  }
   0xb   :  { %s2306_s23 = smov 0   ;;  %s2308_s24 = smov 0  }
   0xc LB: > { %2842 = sst [smem:[#allocation16_spill]] %s2249_s23  ;;  %s2323_s25 = sadd.s32 4294967295, %s2253_s24   ;;  %s2253_s24 = sphi %s2308_s24, %s2870_s24   ;;  %s2249_s23 = sphi %s2306_s23, %s2867_s23   ;;  %s2245_s22 = sphi %s2304_s22, %s2869_s22   ;;  %s2241_s21 = sphi %s2302_s21, %s2868_s21  }
   0xd   : > { %s1544_s26 = sadd.s32 4294967294, %s2253_s24   ;;  %p46_p0 = scmp.ne.s32.totalorder %s2245_s22, %s2241_s21 }
   0xe   : > { %p2833_p1 = scmp.eq.s32.totalorder %s2323_s25, 0  ;;  %p186_p3 = scmp.eq.s32.totalorder %s1544_s26, 1 }
   0xf   : > { %p1545_p5 = scmp.ge.s32.totalorder %s2253_s24, 1  ;;  %p193_p7 = scmp.lt.s32.totalorder %s2253_s24, 3 }
  0x10   : > { %p2332_p4 = por %p2833_p1, %p46_p0  ;;  %p2337_p6 = por %p186_p3, %p46_p0 }
  0x11   : > { %p2342_p8 = pnand %p1545_p5, %p193_p7  ;;  %s2255_s30 = smov [#allocation7]  }
  0x12   : > { %s2843_s27 = scalar_select %p2332_p4, 1, 0 }
  0x13   : > { %s2844_s28 = scalar_select %p2337_p6, 1, 0 }
  0x14   : > { %s2845_s29 = scalar_select %p2342_p8, 1, 0 }
  0x15   : > { %s205_s7 = sshll.u32 %s2255_s30, 4  ;;  %p1892_p9 = pneg %p2342_p8  ;;  %s206_s7 = int_to_ptr.vmem [resolvable:$true] %s205_s7 }
  0x16   : > { %s2256_s9 = smov [#allocation8]   ;;  %s2080_s11 = scalar_lea.vmem %s206_s7, 3072 }
  0x17   : > { %p2351_p11 = pnand %p1892_p9, %p2833_p1  ;;  %s221_s10 = sshll.u32 %s2256_s9, 4  ;;  %s222_s10 = int_to_ptr.vmem [resolvable:$true] %s221_s10 }
  0x18   : > { %p2081_p13 = scmp.ne.s32.totalorder %s206_s7, %s2080_s11  ;;  %p2088_p5 = scmp.lt.s32.totalorder %s206_s7, %s206_s7 }
  0x19   : > { %p2071_p12 = pneg %p2351_p11  ;;  %p2089_p7 = scmp.lt.s32.totalorder %s2080_s11, %s2080_s11 }
  0x1b   : > { %p2083_p0 = pnand %p2081_p13, %p2071_p12  ;;  %p2090_p10 = por %p2089_p7, %p2088_p5 }
  0x1d   : > { %p2084_p3 = pneg %p2083_p0 }
  0x1f   : > { %p2091_p9 = pnand %p2090_p10, %p2084_p3 }
  0x21   : > { %2094 = shalt.err (!%p2091_p9)
}
  0x22   : > { %s2257_s12 = smov 192   ;;  %s2258_s13 = smov 12  }
  0x23   : > { %s2847_s2 = sld [smem:[#allocation19_spill]]  ;;  %s2106_s16 = scalar_lea.vmem %s222_s10, 1024 }
  0x24   : > { %p2107_p1 = scmp.ne.s32.totalorder %s222_s10, %s2106_s16  ;;  %p2114_p2 = scmp.lt.s32.totalorder %s222_s10, %s222_s10 }
  0x25   : > { %p2115_p6 = scmp.lt.s32.totalorder %s2106_s16, %s2106_s16 }
  0x26   : > { %p2109_p13 = pnand %p2107_p1, %p2071_p12 }
  0x27   : > { %p2116_p5 = por %p2115_p6, %p2114_p2 }
  0x28   : > { %p2110_p0 = pneg %p2109_p13 }
  0x29   : > { %1895 = dma.hbm_to_vmem [thread:$0]  (!%p2351_p11), %s2847_s2, 3072, %s206_s7, [#allocation6], %s2257_s12, %s2257_s12, %s2258_s13  }
  0x2a   : > { %p2117_p10 = pnand %p2116_p5, %p2110_p0 }
  0x2c   : > { %2120 = shalt.err (!%p2117_p10)
}
  0x2d   : > { %s2834_s17 = smov 64   ;;  %s2260_s18 = smov 4  }
  0x2e   : > { %s2848_s4 = sld [smem:[#allocation20_spill]]  ;;  %s2377_s26 = sadd.s32 1, %s2253_s24  }
  0x2f   : > { %s30_s30 = ssub.s32 %s2253_s24, %s2377_s26  ;;  %s33_s7 = sadd.s32 1, %s2249_s23 }
  0x30   : > { %p31_p1 = scmp.eq.s32.totalorder %s30_s30, 0  ;;  %p40_p2 = scmp.ne.s32.totalorder %s2249_s23, %s2245_s22 }
  0x31   : > { %p41_p6 = scmp.eq.s32.totalorder %s2253_s24, 0  ;;  %p2850_p3 = scmp.eq.s32.totalorder %s2323_s25, 1 }
  0x32   : > { %s2386_s9 = scalar_select %p31_p1, %s2249_s23, %s33_s7  }
  0x33   : > { %p42_p12 = por %p41_p6, %p40_p2  ;;  %p2390_p7 = por %p2850_p3, %p40_p2 }
  0x34   : > { %1898 = dma.hbm_to_vmem [thread:$0]  (!%p2351_p11), %s2848_s4, 1024, %s222_s10, [#allocation9], %s2834_s17, %s2834_s17, %s2260_s18  }
  0x35   : > { %2849 = sst [smem:[#allocation17_spill]] %s2386_s9  ;;  %p1912_p9 = scmp.lt.s32.totalorder %s2253_s24, 2 }
  0x36   : > { %s2851_s8 = scalar_select %p2390_p7, 1, 0 }
  0x37   : > { %s2396_s11 = sand.u32 1, %s2249_s23   ;;  %s1621_s12 = sshll.u32 %s2253_s24, 10 }
  0x38   : > { %s1549_s10 = sshll.u32 %s2396_s11, 6  ;;  %s2852_s0 = sld [smem:[#allocation18_spill]] }
  0x39   : > { %s242_s16 = scalar_lea.vmem [#allocation2], %s1549_s10  ;;  %p2407_p11 = pnand %p1912_p9, %p42_p12 }
  0x3a   : > { %s249_s19 = sshll.u32 %s242_s16, 4  ;;  %s2405_s19 = int_to_ptr.vmem [resolvable:$true] %s249_s19 }
  0x3b   : > { %p2123_p0 = pneg %p2407_p11 }
  0x3e   : > { %s2403_s15 = scalar_lea.hbm %s2852_s0, %s1621_s12  ;;  %s2126_s13 = scalar_lea.hbm %s2852_s0, 2048 }
  0x3f   : > { %s2121_s17 = scalar_lea.hbm %s2403_s15, 1024  ;;  %p2127_p1 = scmp.lt.s32.totalorder %s2403_s15, %s2852_s0 }
  0x40   : > { %p2122_p13 = scmp.ne.s32.totalorder %s2403_s15, %s2121_s17  ;;  %p2128_p2 = scmp.lt.s32.totalorder %s2126_s13, %s2121_s17 }
  0x42   : > { %p2124_p5 = pnand %p2123_p0, %p2122_p13  ;;  %p2129_p6 = por %p2128_p2, %p2127_p1 }
  0x44   : > { %p2125_p10 = pneg %p2124_p5 }
  0x46   : > { %p2130_p12 = pnand %p2129_p6, %p2125_p10 }
  0x48   : > { %2133 = shalt.err (!%p2130_p12)
}
  0x49   : > { %s2134_s30 = scalar_lea.vmem %s2405_s19, 1024  ;;  %s2261_s10 = smov [#allocation2]  }
  0x4a   : > { %p2135_p3 = scmp.ne.s32.totalorder %s2405_s19, %s2134_s30  ;;  %s2139_s12 = sshll.u32 %s2261_s10, 4  ;;  %s2140_s12 = int_to_ptr.vmem [resolvable:$false] %s2139_s12 }
  0x4b   : > { %s2141_s7 = scalar_lea.vmem %s2140_s12, 2048  ;;  %p2142_p5 = scmp.lt.s32.totalorder %s2405_s19, %s2140_s12 }
  0x4c   : > { %p2137_p9 = pnand %p2135_p3, %p2123_p0  ;;  %p2143_p7 = scmp.lt.s32.totalorder %s2141_s7, %s2134_s30 }
  0x4e   : > { %p2138_p13 = pneg %p2137_p9  ;;  %p2144_p4 = por %p2143_p7, %p2142_p5 }
  0x50   : > { %p2145_p1 = pnand %p2144_p4, %p2138_p13 }
  0x52   : > { %2148 = shalt.err (!%p2145_p1)
}
  0x53   : > { %s2854_s17 = smov 64   ;;  %s2855_s13 = scalar_lea.sflag [#allocation3], %s2396_s11 }
  0x54   : > { %1902 = dma.hbm_to_vmem [thread:$0]  (!%p2407_p11), %s2403_s15, 1024, %s2405_s19, %s2855_s13, %s2854_s17, %s2854_s17, %s2260_s18  }
  0x55   : > { %s1552_s14 = sshll.u32 %s2253_s24, 4  ;;  %s262_s16 = scalar_lea.vmem [#allocation5], %s2396_s11 }
  0x56   : > { %s269_s30 = sshll.u32 %s262_s16, 4  ;;  %s267_s12 = scalar_lea.hbm %s2827_s1, %s1552_s14  ;;  %s270_s30 = int_to_ptr.vmem [resolvable:$true] %s269_s30 }
  0x57   : > { %s2856_s0 = sand.u32 1, %s2253_s24   ;;  %s2149_s4 = scalar_lea.hbm %s267_s12, 16 }
  0x58   : > { %s260_s2 = scalar_lea.sflag [#allocation6], %s2856_s0  ;;  %p2150_p4 = scmp.ne.s32.totalorder %s267_s12, %s2149_s4 }
  0x59   : > { %s2154_s18 = scalar_lea.hbm %s2827_s1, 32  ;;  %p2155_p2 = scmp.lt.s32.totalorder %s267_s12, %s2827_s1 }
  0x5a   : > { %p2152_p7 = pnand %p2150_p4, %p2123_p0  ;;  %p2156_p6 = scmp.lt.s32.totalorder %s2154_s18, %s2149_s4 }
  0x5c   : > { %p2153_p10 = pneg %p2152_p7  ;;  %p2157_p12 = por %p2156_p6, %p2155_p2 }
  0x5e   : > { %p2158_p3 = pnand %p2157_p12, %p2153_p10 }
  0x60   : > { %2161 = shalt.err (!%p2158_p3)
}
  0x61   : > { %s2162_s19 = scalar_lea.vmem %s270_s30, 16  ;;  %s2262_s0 = smov [#allocation5]  }
  0x62   : > { %p2163_p9 = scmp.ne.s32.totalorder %s270_s30, %s2162_s19  ;;  %s2167_s17 = sshll.u32 %s2262_s0, 4  ;;  %s2168_s17 = int_to_ptr.vmem [resolvable:$false] %s2167_s17 }
  0x63   : > { %s2169_s23 = scalar_lea.vmem %s2168_s17, 32  ;;  %p2170_p1 = scmp.lt.s32.totalorder %s270_s30, %s2168_s17 }
  0x64   : > { %p2165_p13 = pnand %p2163_p9, %p2123_p0  ;;  %p2171_p4 = scmp.lt.s32.totalorder %s2169_s23, %s2162_s19 }
  0x66   : > { %p2166_p5 = pneg %p2165_p13  ;;  %p2172_p7 = por %p2171_p4, %p2170_p1 }
  0x68   : > { %p2173_p8 = pnand %p2172_p7, %p2166_p5 }
  0x6a   : > { %2176 = shalt.err (!%p2173_p8)
}
  0x6b   : > { %1905 = dma.hbm_to_vmem [thread:$0]  (!%p2407_p11), %s267_s12, 16, %s270_s30, %s260_s2  }
  0x6c   : > { %p2857_p10 = scmp.ne.s32.totalorder %s2845_s29, 0 }
  0x6d   : > { %s2466_s4 = sand.u32 (!%p2857_p10), 1, %s2245_s22   ;;  %p2858_p0 = scmp.ne.s32.totalorder (!%p2857_p10), %s2843_s27, 0 }
  0x6e   : > { %278 = sbr.rel (%p2857_p10) target bundleno = 1441 (0x5a1), region = 44  ;;  %s1554_s9 = sshll.u32 (!%p2857_p10), %s2466_s4, 6 }
  0x6f   : > { %s281_s13 = scalar_lea.sflag (!%p2857_p10), [#allocation3], %s2466_s4  ;;  %s2472_s14 = scalar_lea.vmem (!%p2857_p10), [#allocation2], %s1554_s9 }
  0x73   : > { %2220 = dma.done.wait (%p2858_p0), %s281_s13, 1024  }
  0x74   : > { %2222 = vsyncadd (%p2858_p0), %s281_s13, 4294966272  ;;  %s289_s2 = sand.u32 1, %s2323_s25   ;;  %s292_s20 = scalar_lea.vmem [#allocation5], %s2466_s4 }
  0x75   : > { %s290_s29 = scalar_lea.sflag [#allocation6], %s289_s2 }
  0x76   : > { %2224 = dma.done.wait (%p2858_p0), %s290_s29, 16  }
  0x77   : > { %2226 = vsyncadd (%p2858_p0), %s290_s29, 4294967280  ;;  %p2859_p8 = scmp.eq.s32.totalorder %s2323_s25, 0 }
  0x79   : > { %2228 = dma.done.wait (%p2859_p8), [#allocation6], 3072   ;;  %p2860_p11 = pmov %p2859_p8 }
  0x7a   : > { %p2861_p2 = pmov %p2859_p8 }
  0x7b   : > { %2230 = vsyncadd (%p2860_p11), [#allocation6], 4294964224 }
  0x7c   : > { %2232 = dma.done.wait (%p2861_p2), [#allocation9], 1024   ;;  %p2862_p6 = pmov %p2861_p2 }
  0x7d   : > { %v2263_v0 = vmov 0   ;;  %v1957_v1 = vld [vmem:[#allocation7 + $0xac] ss:$12 sps:$4 sm:$0xff]   ;;  %v1959_v2 = vld [vmem:[#allocation7 + $0xa8] ss:$12 sps:$4 sm:$0xff]   ;;  %v1981_v9 = vld [vmem:[%s2472_s14] sm:$0xff]   ;;  %v384_v25 = vlaneseq }
  0x7e   : > { %2234 = vsyncadd (%p2862_p6), [#allocation9], 4294966272  ;;  %607 = vmatprep.mubr.bf16.mxu0 %v2263_v0  ;;  %575 = vmatprep.subr.bf16.mxu0 %v1957_v1  ;;  %v1960_v3 = vld [vmem:[#allocation7 + $0x94] ss:$12 sps:$4 sm:$0xff]   ;;  %v1962_v4 = vld [vmem:[#allocation7 + $0x90] ss:$12 sps:$4 sm:$0xff]  }
  0x7f   : > { %576 = vmatpush1.bf16.msra.mxu0 %v1959_v2  ;;  %v1963_v5 = vld [vmem:[#allocation7 + $0x7c] ss:$12 sps:$4 sm:$0xff]   ;;  %v1965_v6 = vld [vmem:[#allocation7 + $0x78] ss:$12 sps:$4 sm:$0xff]   ;;  %v1968_v8 = vld [vmem:[#allocation7 + $0x60] ss:$12 sps:$4 sm:$0xff]   ;;  %1766 = vmatprep.mubr.bf16.mxu1 %v1981_v9 }
  0x80   : > { %577 = vmatprep.subr.bf16.mxu0 %v1960_v3  ;;  %v1966_v7 = vld [vmem:[#allocation7 + $0x64] ss:$12 sps:$4 sm:$0xff]   ;;  %v1969_v10 = vld [vmem:[#allocation7 + $0x4c] ss:$12 sps:$4 sm:$0xff]   ;;  %v1971_v11 = vld [vmem:[#allocation7 + $0x48] ss:$12 sps:$4 sm:$0xff]  }
  0x81   : > { %v1972_v12 = vld [vmem:[#allocation7 + $0x34] ss:$12 sps:$4 sm:$0xff]   ;;  %v1974_v13 = vld [vmem:[#allocation7 + $0x30] ss:$12 sps:$4 sm:$0xff]   ;;  %v1977_v15 = vld [vmem:[#allocation7 + $0x18] ss:$12 sps:$4 sm:$0xff]  }
  0x82   : > { %v1975_v14 = vld [vmem:[#allocation7 + $0x1c] ss:$12 sps:$4 sm:$0xff]   ;;  %v1978_v16 = vld [vmem:[#allocation7 + $0x4] ss:$12 sps:$4 sm:$0xff]   ;;  %v1980_v17 = vld [vmem:[#allocation7] ss:$12 sps:$4 sm:$0xff]  }
  0x83   : > { %578 = vmatpush1.bf16.msra.mxu0 %v1962_v4  ;;  %v2494_v18 = vld [vmem:[%s2472_s14 + $0x8] sm:$0xff]   ;;  %v2498_v19 = vld [vmem:[%s2472_s14 + $0x10] sm:$0xff]   ;;  %v2502_v20 = vld [vmem:[%s2472_s14 + $0x18] sm:$0xff]   ;;  %v2521_v26 = vshrl.u32 %v384_v25, 7  ;;  %s2766_s10 = scalar_lea.vmem [#allocation10], %s1554_s9  ;;  %s1638_s18 = sshll.u32 %s2323_s25, 10 }
  0x84   : > { %579 = vmatprep.subr.bf16.mxu0 %v1963_v5  ;;  %v2506_v21 = vld [vmem:[%s2472_s14 + $0x20] sm:$0xff]   ;;  %v2510_v22 = vld [vmem:[%s2472_s14 + $0x28] sm:$0xff]   ;;  %v2514_v23 = vld [vmem:[%s2472_s14 + $0x30] sm:$0xff]   ;;  %s1432_s12 = sshll.u32 %s2766_s10, 4  ;;  %s2781_s19 = scalar_lea.hbm %s2832_s6, %s1638_s18  ;;  %s2776_s12 = int_to_ptr.vmem [resolvable:$true] %s1432_s12 }
  0x85   : > { %v2518_v24 = vld [vmem:[%s2472_s14 + $0x38] sm:$0xff]   ;;  %v386_v27 = vsub.s32 0, %v2521_v26  ;;  %v2527_v28 = vld [vmem:[%s2829_s3] sm:$0x7]  ;;  %v390_v29 = vsub.s32 1, %v2521_v26  ;;  %s1419_s0 = scalar_lea.sflag [#allocation4], %s2466_s4 }
  0x86   : > { %v1989_v1 = vld [vmem:[#allocation7 + $0xb0] ss:$12 sps:$4 sm:$0xff]   ;;  %v1990_v2 = vld [vmem:[#allocation7 + $0x98] ss:$12 sps:$4 sm:$0xff]   ;;  %s2177_s17 = scalar_lea.vmem %s2776_s12, 1024  ;;  %p2863_p3 = scmp.ne.s32.totalorder %s2851_s8, 0 }
  0x87   : > { %580 = vmatpush1.bf16.msra.mxu0 %v1965_v6  ;;  %v2531_v31 = vrot.slane %v2527_v28, %v386_v27  ;;  %v2534_v33 = vrot.slane %v2527_v28, %v390_v29  ;;  %1750 = vmatprep.subr.bf16.mxu1 %v1989_v1  ;;  %v1994_v29 = vld [vmem:[#allocation7 + $0x38] ss:$12 sps:$4 sm:$0xff]   ;;  %p2178_p12 = scmp.ne.s32.totalorder %s2776_s12, %s2177_s17  ;;  %s2264_s25 = smov [#allocation10]  }
  0x88   : > { %581 = vmatprep.subr.bf16.mxu0 %v1966_v7  ;;  %1751 = vmatpush3.bf16.msra.mxu1 %v1989_v1  ;;  %v1991_v7 = vld [vmem:[#allocation7 + $0x80] ss:$12 sps:$4 sm:$0xff]   ;;  %s2181_s23 = sshll.u32 %s2264_s25, 4  ;;  %s2182_s23 = int_to_ptr.vmem [resolvable:$false] %s2181_s23 }
  0x89   : > { %1752 = vmatprep.subr.bf16.mxu1 %v1990_v2  ;;  %p2179_p9 = pnand %p2178_p12, %p2863_p3  ;;  %s2183_s9 = scalar_lea.vmem %s2182_s23, 2048 }
  0x8a   : > { %p2184_p5 = scmp.lt.s32.totalorder %s2776_s12, %s2182_s23  ;;  %p2185_p1 = scmp.lt.s32.totalorder %s2183_s9, %s2177_s17 }
  0x8b   : > { %582 = vmatpush1.bf16.msra.mxu0 %v1968_v8  ;;  %p2180_p13 = pneg %p2179_p9 }
  0x8c   : > { %583 = vmatprep.subr.bf16.mxu0 %v1969_v10  ;;  %1753 = vmatpush3.bf16.msra.mxu1 %v1990_v2  ;;  %p2186_p4 = por %p2185_p1, %p2184_p5 }
  0x8d   : > { %1754 = vmatprep.subr.bf16.mxu1 %v1991_v7 }
  0x8e   : > { %p2187_p7 = pnand %p2186_p4, %p2180_p13 }
  0x8f   : > { %584 = vmatpush1.bf16.msra.mxu0 %v1971_v11  ;;  %v1992_v11 = vld [vmem:[#allocation7 + $0x68] ss:$12 sps:$4 sm:$0xff]  }
  0x90   : > { %585 = vmatprep.subr.bf16.mxu0 %v1972_v12  ;;  %1755 = vmatpush3.bf16.msra.mxu1 %v1991_v7 }
  0x91   : > { %1756 = vmatprep.subr.bf16.mxu1 %v1992_v11 }
  0x93   : > { %586 = vmatpush1.bf16.msra.mxu0 %v1974_v13 }
  0x94   : > { %587 = vmatprep.subr.bf16.mxu0 %v1975_v14  ;;  %1757 = vmatpush3.bf16.msra.mxu1 %v1992_v11 }
  0x97   : > { %588 = vmatpush1.bf16.msra.mxu0 %v1977_v15 }
  0x98   : > { %589 = vmatprep.subr.bf16.mxu0 %v1978_v16  ;;  %v1993_v16 = vld [vmem:[#allocation7 + $0x50] ss:$12 sps:$4 sm:$0xff]  }
  0x99   : > { %1758 = vmatprep.subr.bf16.mxu1 %v1993_v16 }
  0x9a   : > { %1759 = vmatpush3.bf16.msra.mxu1 %v1993_v16 }
  0x9b   : > { %590 = vmatpush1.bf16.msra.mxu0 %v1980_v17  ;;  %1760 = vmatprep.subr.bf16.mxu1 %v1994_v29 }
  0x9e   : > { %608 = vmatmul.mubr.bf16.vlgmr.msra.gmra.mxu0 %v1981_v9  ;;  %1761 = vmatpush3.bf16.msra.mxu1 %v1994_v29 }
  0x9f   : > { %617 = vmatprep.mubr.bf16.mxu0 %v2263_v0 }
  0xa6   : > { %618 = vmatmul.mubr.bf16.gmra.mxu0 %v2494_v18 }
  0xa7   : > { %627 = vmatprep.mubr.bf16.mxu0 %v2263_v0 }
  0xae   : > { %628 = vmatmul.mubr.bf16.gmra.mxu0 %v2498_v19 }
  0xaf   : > { %637 = vmatprep.mubr.bf16.mxu0 %v2263_v0 }
  0xb6   : > { %638 = vmatmul.mubr.bf16.gmra.mxu0 %v2502_v20 }
  0xb7   : > { %647 = vmatprep.mubr.bf16.mxu0 %v2263_v0 }
  0xbe   : > { %648 = vmatmul.mubr.bf16.gmra.mxu0 %v2506_v21 }
  0xbf   : > { %657 = vmatprep.mubr.bf16.mxu0 %v2263_v0 }
  0xc6   : > { %658 = vmatmul.mubr.bf16.gmra.mxu0 %v2510_v22 }
  0xc7   : > { %667 = vmatprep.mubr.bf16.mxu0 %v2263_v0 }
  0xce   : > { %668 = vmatmul.mubr.bf16.gmra.mxu0 %v2514_v23 }
  0xcf   : > { %677 = vmatprep.mubr.bf16.mxu0 %v2263_v0 }
  0xd6   : > { %678 = vmatmul.mubr.bf16.gmra.mxu0 %v2518_v24 }
 0x15e   : > { %v609_v30 = vpop.f32.mrf.mxu0 }
 0x15f   : > { %v610_v35 = vadd.f32 %v609_v30, %v2531_v31 }
 0x160   : > { %v611_v32 = vpop.f32.mrf.mxu0 }
 0x161   : > { %v612_v38 = vadd.f32 %v611_v32, %v2534_v33 }
 0x162   : > { %v613_v34 = vpop.f32.mrf.mxu0 }
 0x163   : > { %v614_v36 = vadd.f32 %v613_v34, %v2531_v31 }
 0x164   : > { %v615_v37 = vpop.f32.mrf.mxu0 }
 0x165   : > { %v785_v39 = vpack.c.bf16 %v614_v36, %v610_v35  ;;  %v616_v40 = vadd.f32 %v615_v37, %v2534_v33 }
 0x166   : > { %v619_v41 = vpop.f32.mrf.mxu0 }
 0x167   : > { %v2540_v42 = vpack.c.bf16 %v616_v40, %v612_v38  ;;  %v2543_v43 = vadd.f32 %v619_v41, %v2531_v31  ;;  %1798 = vmatprep.mubr.bf16.mxu0 %v785_v39 }
 0x168   : > { %v621_v44 = vpop.f32.mrf.mxu0 }
 0x169   : > { %v622_v48 = vadd.f32 %v621_v44, %v2534_v33 }
 0x16a   : > { %v623_v45 = vpop.f32.mrf.mxu0 }
 0x16b   : > { %v2546_v46 = vadd.f32 %v623_v45, %v2531_v31 }
 0x16c   : > { %v625_v47 = vpop.f32.mrf.mxu0 }
 0x16d   : > { %v786_v49 = vpack.c.bf16 %v2546_v46, %v2543_v43  ;;  %v626_v50 = vadd.f32 %v625_v47, %v2534_v33  ;;  %v1590_v43 = vld [vmem:[%s292_s20] ss:$0 sm:$0xff] }
 0x16e   : > { %v629_v51 = vpop.f32.mrf.mxu0 }
 0x16f   : > { %v2552_v52 = vpack.c.bf16 %v626_v50, %v622_v48  ;;  %v2555_v53 = vadd.f32 %v629_v51, %v2531_v31 }
 0x170   : > { %v631_v54 = vpop.f32.mrf.mxu0 }
 0x171   : > { %v632_v58 = vadd.f32 %v631_v54, %v2534_v33 }
 0x172   : > { %v633_v55 = vpop.f32.mrf.mxu0 }
 0x173   : > { %v2558_v56 = vadd.f32 %v633_v55, %v2531_v31 }
 0x174   : > { %v635_v57 = vpop.f32.mrf.mxu0 }
 0x175   : > { %v787_v59 = vpack.c.bf16 %v2558_v56, %v2555_v53  ;;  %v636_v60 = vadd.f32 %v635_v57, %v2534_v33 }
 0x176   : > { %v639_v61 = vpop.f32.mrf.mxu0 }
 0x177   : > { %v2564_v62 = vpack.c.bf16 %v636_v60, %v632_v58  ;;  %v2567_v63 = vadd.f32 %v639_v61, %v2531_v31 }
 0x178   : > { %v2569_v0 = vpop.f32.mrf.mxu0 }
 0x17a   : > { %v643_v3 = vpop.f32.mrf.mxu0 }
 0x17b   : > { %v2572_v4 = vadd.f32 %v643_v3, %v2531_v31 }
 0x17c   : > { %v2574_v5 = vpop.f32.mrf.mxu0 }
 0x17d   : > { %v788_v6 = vpack.c.bf16 %v2572_v4, %v2567_v63  ;;  %v646_v16 = vadd.f32 %v2574_v5, %v2534_v33 }
 0x17e   : > { %v649_v8 = vpop.f32.mrf.mxu0 }
 0x17f   : > { %v2579_v9 = vadd.f32 %v649_v8, %v2531_v31 }
 0x180   : > { %v651_v10 = vpop.f32.mrf.mxu0 }
 0x181   : > { %v652_v11 = vadd.f32 %v651_v10, %v2534_v33 }
 0x182   : > { %v653_v12 = vpop.f32.mrf.mxu0 }
 0x183   : > { %v2582_v13 = vadd.f32 %v653_v12, %v2531_v31 }
 0x184   : > { %v655_v14 = vpop.f32.mrf.mxu0 }
 0x185   : > { %v789_v15 = vpack.c.bf16 %v2582_v13, %v2579_v9  ;;  %v656_v8 = vadd.f32 %v655_v14, %v2534_v33 }
 0x186   : > { %v659_v17 = vpop.f32.mrf.mxu0 }
 0x187   : > { %v660_v25 = vadd.f32 %v659_v17, %v2531_v31  ;;  %v797_v12 = vpack.c.bf16 %v656_v8, %v652_v11  ;;  %v642_v17 = vadd.f32 %v2569_v0, %v2534_v33 }
 0x188   : > { %v661_v27 = vpop.f32.mrf.mxu0 }
 0x189   : > { %v662_v7 = vadd.f32 %v661_v27, %v2534_v33 }
 0x18a   : > { %v663_v30 = vpop.f32.mrf.mxu0 }
 0x18b   : > { %v664_v32 = vadd.f32 %v663_v30, %v2531_v31 }
 0x18c   : > { %v665_v34 = vpop.f32.mrf.mxu0 }
 0x18d   : > { %v790_v35 = vpack.c.bf16 %v664_v32, %v660_v25  ;;  %v666_v3 = vadd.f32 %v665_v34, %v2534_v33  ;;  %v796_v25 = vpack.c.bf16 %v646_v16, %v642_v17 }
 0x18e   : > { %v669_v36 = vpop.f32.mrf.mxu0 }
 0x18f   : > { %v670_v37 = vadd.f32 %v669_v36, %v2531_v31 }
 0x190   : > { %v671_v38 = vpop.f32.mrf.mxu0 }
 0x191   : > { %v672_v61 = vadd.f32 %v671_v38, %v2534_v33 }
 0x192   : > { %v673_v39 = vpop.f32.mrf.mxu0 }
 0x193   : > { %v674_v40 = vadd.f32 %v673_v39, %v2531_v31 }
 0x194   : > { %v675_v41 = vpop.f32.mrf.mxu0 }
 0x195   : > { %v791_v44 = vpack.c.bf16 %v674_v40, %v670_v37  ;;  %v676_v55 = vadd.f32 %v675_v41, %v2534_v33 }
 0x196   : > { %v679_v45 = vpop.f32.mrf.mxu0 }
 0x197   : > { %v680_v47 = vadd.f32 %v679_v45, %v2531_v31  ;;  %v799_v2 = vpack.c.bf16 %v676_v55, %v672_v61 }
 0x198   : > { %v681_v48 = vpop.f32.mrf.mxu0 }
 0x199   : > { %v682_v57 = vadd.f32 %v681_v48, %v2534_v33 }
 0x19a   : > { %v683_v50 = vpop.f32.mrf.mxu0 }
 0x19b   : > { %v684_v51 = vadd.f32 %v683_v50, %v2531_v31  ;;  %v798_v31 = vpack.c.bf16 %v666_v3, %v662_v7 }
 0x19c   : > { %v685_v54 = vpop.f32.mrf.mxu0 }
 0x19d   : > { %v792_v58 = vpack.c.bf16 %v684_v51, %v680_v47  ;;  %v686_v60 = vadd.f32 %v685_v54, %v2534_v33  ;;  %v1995_v33 = vld [vmem:[#allocation7 + $0x20] ss:$12 sps:$4 sm:$0xff]   ;;  %v394_v54 = vsub.s32 2, %v2521_v26 }
 0x19e   : > { %1762 = vmatprep.subr.bf16.mxu1 %v1995_v33 }
 0x19f   : > { %v800_v1 = vpack.c.bf16 %v686_v60, %v682_v57  ;;  %1763 = vmatpush3.bf16.msra.mxu1 %v1995_v33 }
 0x1a1   : > { %1782 = vmatprep.subr.bf16.mxu0 %v800_v1 }
 0x1a2   : > { %1783 = vmatpush3.bf16.xpose.msra.mxu0 %v800_v1 }
 0x1a3   : > { %1784 = vmatprep.subr.bf16.mxu0 %v799_v2 }
 0x1aa   : > { %1785 = vmatpush3.bf16.xpose.msra.mxu0 %v799_v2 }
 0x1ab   : > { %1786 = vmatprep.subr.bf16.mxu0 %v798_v31 }
 0x1b2   : > { %1787 = vmatpush3.bf16.xpose.msra.mxu0 %v798_v31 }
 0x1b3   : > { %1788 = vmatprep.subr.bf16.mxu0 %v797_v12 }
 0x1ba   : > { %1789 = vmatpush3.bf16.xpose.msra.mxu0 %v797_v12 }
 0x1bb   : > { %1790 = vmatprep.subr.bf16.mxu0 %v796_v25 }
 0x1c2   : > { %1791 = vmatpush3.bf16.xpose.msra.mxu0 %v796_v25 }
 0x1c3   : > { %1792 = vmatprep.subr.bf16.mxu0 %v2564_v62 }
 0x1ca   : > { %1793 = vmatpush3.bf16.xpose.msra.mxu0 %v2564_v62 }
 0x1cb   : > { %1794 = vmatprep.subr.bf16.mxu0 %v2552_v52 }
 0x1d2   : > { %1795 = vmatpush3.bf16.xpose.msra.mxu0 %v2552_v52 }
 0x1d3   : > { %1796 = vmatprep.subr.bf16.mxu0 %v2540_v42 }
 0x1da   : > { %1797 = vmatpush3.bf16.xpose.msra.mxu0 %v2540_v42  ;;  %v1996_v42 = vld [vmem:[#allocation7 + $0x8] ss:$12 sps:$4 sm:$0xff]  }
 0x1db   : > { %1764 = vmatprep.subr.bf16.mxu1 %v1996_v42 }
 0x1dc   : > { %1765 = vmatpush3.bf16.msra.mxu1 %v1996_v42 }
 0x1df   : > { %1767 = vmatmul.mubr.bf16.vlgmr.msra.gmra.mxu1 %v2494_v18 }
 0x1e0   : > { %1770 = vmatprep.mubr.bf16.mxu1 %v2498_v19 }
 0x1e1   : > { %1799 = vmatmul.mubr.bf16.vlgmr.msra.gmra.mxu0 %v786_v49 }
 0x1e2   : > { %1802 = vmatprep.mubr.bf16.mxu0 %v787_v59 }
 0x1e7   : > { %1771 = vmatmul.mubr.bf16.gmra.mxu1 %v2502_v20 }
 0x1e8   : > { %1774 = vmatprep.mubr.bf16.mxu1 %v2506_v21 }
 0x1e9   : > { %1803 = vmatmul.mubr.bf16.gmra.mxu0 %v788_v6 }
 0x1ea   : > { %1806 = vmatprep.mubr.bf16.mxu0 %v789_v15 }
 0x1ef   : > { %1775 = vmatmul.mubr.bf16.gmra.mxu1 %v2510_v22 }
 0x1f0   : > { %1778 = vmatprep.mubr.bf16.mxu1 %v2514_v23 }
 0x1f1   : > { %1807 = vmatmul.mubr.bf16.gmra.mxu0 %v790_v35 }
 0x1f2   : > { %1810 = vmatprep.mubr.bf16.mxu0 %v791_v44 }
 0x1f7   : > { %1779 = vmatmul.mubr.bf16.gmra.mxu1 %v2518_v24 }
 0x1f9   : > { %1811 = vmatmul.mubr.bf16.gmra.mxu0 %v792_v58  ;;  %v395_v58 = vrot.slane %v2527_v28, %v394_v54 }
 0x29f   : > { %v1768_v38 = vpop.f32.mrf.mxu1 }
 0x2a1   : > { %v1800_v46 = vpop.f32.mrf.mxu0  ;;  %v722_v39 = vpop.f32.mrf.mxu1 }
 0x2a2   : > { %v2631_v49 = vadd.f32 %v1800_v46, %v1590_v43 }
 0x2a3   : > { %v850_v52 = vpop.f32.mrf.mxu0  ;;  %v1769_v40 = vpop.f32.mrf.mxu1 }
 0x2a4   : > { %v2633_v53 = vadd.f32 %v1590_v43, %v850_v52  ;;  %917 = vmax.xlane.f32.xlu1 %v2631_v49 }
 0x2a5   : > { %v1801_v18 = vpop.f32.mrf.mxu0  ;;  %v725_v41 = vpop.f32.mrf.mxu1 }
 0x2a6   : > { %v2636_v19 = vadd.f32 %v1801_v18, %v1590_v43  ;;  %913 = vmax.xlane.f32.xlu0 %v2633_v53 }
 0x2a7   : > { %v853_v20 = vpop.f32.mrf.mxu0  ;;  %v1772_v44 = vpop.f32.mrf.mxu1 }
 0x2a8   : > { %v2639_v21 = vadd.f32 %v1590_v43, %v853_v20  ;;  %919 = vmax.xlane.f32.xlu1 %v2636_v19  ;;  %v747_v28 = vadd.f32 %v1772_v44, %v395_v58  ;;  %v731_v20 = vadd.f32 %v1768_v38, %v395_v58 }
 0x2a9   : > { %v1804_v22 = vpop.f32.mrf.mxu0  ;;  %v738_v45 = vpop.f32.mrf.mxu1 }
 0x2aa   : > { %915 = vmax.xlane.f32.xlu0 %v2639_v21  ;;  %v2646_v62 = vadd.f32 %v1804_v22, %v1590_v43  ;;  %v739_v46 = vadd.f32 %v738_v45, %v395_v58  ;;  %v734_v22 = vadd.f32 %v1769_v40, %v395_v58 }
 0x2ab   : > { %v866_v23 = vpop.f32.mrf.mxu0  ;;  %v1773_v47 = vpop.f32.mrf.mxu1 }
 0x2ac   : > { %v2643_v24 = vadd.f32 %v1590_v43, %v866_v23  ;;  %v750_v42 = vadd.f32 %v1773_v47, %v395_v58 }
 0x2ad   : > { %v1805_v56 = vpop.f32.mrf.mxu0  ;;  %v741_v48 = vpop.f32.mrf.mxu1 }
 0x2ae   : > { %921 = vmax.xlane.f32.xlu0 %v2643_v24  ;;  %v2652_v5 = vadd.f32 %v1805_v56, %v1590_v43  ;;  %v804_v52 = vpack.c.bf16 %v750_v42, %v747_v28  ;;  %v742_v18 = vadd.f32 %v741_v48, %v395_v58  ;;  %v723_v56 = vadd.f32 %v722_v39, %v395_v58 }
 0x2af   : > { %v869_v59 = vpop.f32.mrf.mxu0  ;;  %v1776_v50 = vpop.f32.mrf.mxu1 }
 0x2b0   : > { %v2648_v63 = vadd.f32 %v1590_v43, %v869_v59  ;;  %v763_v8 = vadd.f32 %v1776_v50, %v395_v58  ;;  %v803_v23 = vpack.c.bf16 %v742_v18, %v739_v46  ;;  %v802_v59 = vpack.c.bf16 %v734_v22, %v731_v20 }
 0x2b1   : > { %v1808_v0 = vpop.f32.mrf.mxu0  ;;  %v754_v51 = vpop.f32.mrf.mxu1 }
 0x2b2   : > { %923 = vmax.xlane.f32.xlu1 %v2648_v63  ;;  %925 = vmax.xlane.f32.xlu0 %v2646_v62  ;;  %v2658_v13 = vadd.f32 %v1808_v0, %v1590_v43  ;;  %v755_v25 = vadd.f32 %v754_v51, %v395_v58  ;;  %v726_v0 = vadd.f32 %v725_v41, %v395_v58 }
 0x2b3   : > { %v882_v4 = vpop.f32.mrf.mxu0  ;;  %v1777_v55 = vpop.f32.mrf.mxu1 }
 0x2b4   : > { %v2654_v6 = vadd.f32 %v1590_v43, %v882_v4  ;;  %v766_v11 = vadd.f32 %v1777_v55, %v395_v58  ;;  %v801_v4 = vpack.c.bf16 %v726_v0, %v723_v56 }
 0x2b5   : > { %v1809_v9 = vpop.f32.mrf.mxu0  ;;  %v757_v57 = vpop.f32.mrf.mxu1 }
 0x2b6   : > { %927 = vmax.xlane.f32.xlu1 %v2652_v5  ;;  %929 = vmax.xlane.f32.xlu0 %v2654_v6  ;;  %v2664_v29 = vadd.f32 %v1809_v9, %v1590_v43  ;;  %v806_v26 = vpack.c.bf16 %v766_v11, %v763_v8  ;;  %v758_v33 = vadd.f32 %v757_v57, %v395_v58 }
 0x2b7   : > { %v885_v10 = vpop.f32.mrf.mxu0  ;;  %v1780_v60 = vpop.f32.mrf.mxu1 }
 0x2b8   : > { %v2660_v14 = vadd.f32 %v1590_v43, %v885_v10  ;;  %v779_v1 = vadd.f32 %v1780_v60, %v395_v58 }
 0x2b9   : > { %v1812_v15 = vpop.f32.mrf.mxu0  ;;  %v770_v61 = vpop.f32.mrf.mxu1 }
 0x2ba   : > { %931 = vmax.xlane.f32.xlu1 %v2660_v14  ;;  %933 = vmax.xlane.f32.xlu0 %v2658_v13  ;;  %v2670_v35 = vadd.f32 %v1812_v15, %v1590_v43  ;;  %v771_v3 = vadd.f32 %v770_v61, %v395_v58 }
 0x2bb   : > { %v898_v27 = vpop.f32.mrf.mxu0  ;;  %v1781_v2 = vpop.f32.mrf.mxu1 }
 0x2bc   : > { %v2666_v30 = vadd.f32 %v1590_v43, %v898_v27  ;;  %v782_v7 = vadd.f32 %v1781_v2, %v395_v58 }
 0x2bd   : > { %v1813_v32 = vpop.f32.mrf.mxu0  ;;  %v773_v31 = vpop.f32.mrf.mxu1 }
 0x2be   : > { %935 = vmax.xlane.f32.xlu1 %v2664_v29  ;;  %937 = vmax.xlane.f32.xlu0 %v2666_v30  ;;  %v2676_v37 = vadd.f32 %v1813_v32, %v1590_v43  ;;  %v808_v12 = vpack.c.bf16 %v782_v7, %v779_v1  ;;  %v774_v16 = vadd.f32 %v773_v31, %v395_v58 }
 0x2bf   : > { %v901_v34 = vpop.f32.mrf.mxu0 }
 0x2c0   : > { %v2672_v36 = vadd.f32 %v1590_v43, %v901_v34  ;;  %v807_v17 = vpack.c.bf16 %v774_v16, %v771_v3  ;;  %1814 = vmatprep.subr.bf16.mxu1 %v808_v12  ;;  %v805_v43 = vpack.c.bf16 %v758_v33, %v755_v25 }
 0x2c1   : > { %1815 = vmatpush3.bf16.msra.mxu1 %v808_v12 }
 0x2c2   : > { %939 = vmax.xlane.f32.xlu1 %v2672_v36  ;;  %941 = vmax.xlane.f32.xlu0 %v2670_v35 }
 0x2c3   : > { %1816 = vmatprep.subr.bf16.mxu1 %v807_v17 }
 0x2c5   : > { %1817 = vmatpush3.bf16.msra.mxu1 %v807_v17 }
 0x2c6   : > { %943 = vmax.xlane.f32.xlu1 %v2676_v37  ;;  %1818 = vmatprep.subr.bf16.mxu1 %v806_v26 }
 0x2c9   : > { %1819 = vmatpush3.bf16.msra.mxu1 %v806_v26 }
 0x2ca   : > { %1820 = vmatprep.subr.bf16.mxu1 %v805_v43 }
 0x2cd   : > { %1821 = vmatpush3.bf16.msra.mxu1 %v805_v43 }
 0x2ce   : > { %1822 = vmatprep.subr.bf16.mxu1 %v804_v52 }
 0x2d1   : > { %1823 = vmatpush3.bf16.msra.mxu1 %v804_v52 }
 0x2d2   : > { %1824 = vmatprep.subr.bf16.mxu1 %v803_v23 }
 0x2d5   : > { %1825 = vmatpush3.bf16.msra.mxu1 %v803_v23 }
 0x2d6   : > { %1826 = vmatprep.subr.bf16.mxu1 %v802_v59 }
 0x2d9   : > { %1827 = vmatpush3.bf16.msra.mxu1 %v802_v59 }
 0x2da   : > { %1828 = vmatprep.subr.bf16.mxu1 %v801_v4 }
 0x2dd   : > { %1829 = vmatpush3.bf16.msra.mxu1 %v801_v4 }
 0x32d   : > { %v918_v9 = vpop.xlane.xlu1 %917 }
 0x32e   : > { %v947_v10 = vsub.f32 %v2631_v49, %v918_v9  ;;  %v1997_v9 = vld [vmem:[#allocation8 + $0x38] sm:$0xff]  }
 0x32f   : > { %v914_v15 = vpop.xlane.xlu0 %913  ;;  %1846 = vmatprep.subr.bf16.mxu1 %v1997_v9 }
 0x330   : > { %v945_v27 = vsub.f32 %v2633_v53, %v914_v15  ;;  %v965_v38 = vmul.f32 1.442695, %v947_v10 }
 0x331   : > { %v920_v32 = vpop.xlane.xlu1 %919 }
 0x332   : > { %v961_v34 = vmul.f32 1.442695, %v945_v27  ;;  %v948_v39 = vsub.f32 %v2636_v19, %v920_v32 }
 0x333   : > { %v916_v40 = vpop.xlane.xlu0 %915 }
 0x334   : > { %2005 = vpow2.f32 %v961_v34  ;;  %v946_v41 = vsub.f32 %v2639_v21, %v916_v40  ;;  %v967_v45 = vmul.f32 1.442695, %v948_v39 }
 0x335   : > { %2007 = vpow2.f32 %v965_v38 }
 0x336   : > { %v963_v44 = vmul.f32 1.442695, %v946_v41 }
 0x337   : > { %v922_v47 = vpop.xlane.xlu0 %921 }
 0x338   : > { %2009 = vpow2.f32 %v963_v44  ;;  %v949_v48 = vsub.f32 %v2643_v24, %v922_v47 }
 0x339   : > { %2011 = vpow2.f32 %v967_v45 }
 0x33a   : > { %v969_v49 = vmul.f32 1.442695, %v949_v48 }
 0x33b   : > { %v924_v50 = vpop.xlane.xlu1 %923  ;;  %v926_v53 = vpop.xlane.xlu0 %925 }
 0x33c   : > { %2013 = vpow2.f32 %v969_v49  ;;  %v950_v51 = vsub.f32 %v2648_v63, %v924_v50  ;;  %v951_v19 = vsub.f32 %v2646_v62, %v926_v53 }
 0x33e   : > { %v971_v54 = vmul.f32 1.442695, %v950_v51  ;;  %v973_v55 = vmul.f32 1.442695, %v951_v19 }
 0x33f   : > { %v928_v57 = vpop.xlane.xlu1 %927  ;;  %v930_v21 = vpop.xlane.xlu0 %929 }
 0x340   : > { %2015 = vpow2.f32 %v971_v54  ;;  %v952_v58 = vsub.f32 %v2652_v5, %v928_v57  ;;  %v953_v60 = vsub.f32 %v2654_v6, %v930_v21 }
 0x341   : > { %v2690_v61 = vpop.eup %2005  ;;  %2017 = vpow2.f32 %v973_v55 }
 0x342   : > { %v975_v24 = vmul.f32 1.442695, %v952_v58  ;;  %v977_v1 = vmul.f32 1.442695, %v953_v60  ;;  %993 = vadd.xlane.f32.xlu0 %v2690_v61  ;;  %v2693_v3 = vpop.eup %2007 }
 0x343   : > { %v932_v2 = vpop.xlane.xlu1 %931  ;;  %v934_v63 = vpop.xlane.xlu0 %933 }
 0x344   : > { %2019 = vpow2.f32 %v975_v24  ;;  %v954_v62 = vsub.f32 %v2660_v14, %v932_v2  ;;  %v955_v7 = vsub.f32 %v2658_v13, %v934_v63 }
 0x345   : > { %v2697_v31 = vpop.eup %2009  ;;  %2021 = vpow2.f32 %v977_v1 }
 0x346   : > { %v979_v5 = vmul.f32 1.442695, %v954_v62  ;;  %v981_v6 = vmul.f32 1.442695, %v955_v7  ;;  %997 = vadd.xlane.f32.xlu0 %v2693_v3  ;;  %995 = vadd.xlane.f32.xlu1 %v2697_v31  ;;  %v2701_v12 = vpop.eup %2011 }
 0x347   : > { %v936_v8 = vpop.xlane.xlu1 %935  ;;  %v938_v11 = vpop.xlane.xlu0 %937 }
 0x348   : > { %2023 = vpow2.f32 %v979_v5  ;;  %v956_v16 = vsub.f32 %v2664_v29, %v936_v8  ;;  %v957_v14 = vsub.f32 %v2666_v30, %v938_v11 }
 0x349   : > { %v2705_v17 = vpop.eup %2013  ;;  %2025 = vpow2.f32 %v981_v6 }
 0x34a   : > { %v983_v13 = vmul.f32 1.442695, %v956_v16  ;;  %v985_v25 = vmul.f32 1.442695, %v957_v14  ;;  %999 = vadd.xlane.f32.xlu1 %v2701_v12  ;;  %1001 = vadd.xlane.f32.xlu0 %v2705_v17  ;;  %v2000_v14 = vld [vmem:[#allocation8 + $0x20] sm:$0xff]  }
 0x34b   : > { %v940_v26 = vpop.xlane.xlu1 %939  ;;  %v942_v33 = vpop.xlane.xlu0 %941 }
 0x34c   : > { %2027 = vpow2.f32 %v983_v13  ;;  %v958_v28 = vsub.f32 %v2672_v36, %v940_v26  ;;  %v959_v42 = vsub.f32 %v2670_v35, %v942_v33 }
 0x34d   : > { %v2711_v43 = vpop.eup %2015  ;;  %2029 = vpow2.f32 %v985_v25 }
 0x34e   : > { %v2713_v29 = vpop.eup %2017  ;;  %v987_v30 = vmul.f32 1.442695, %v958_v28  ;;  %v989_v46 = vmul.f32 1.442695, %v959_v42  ;;  %1003 = vadd.xlane.f32.xlu1 %v2711_v43  ;;  %v2001_v28 = vld [vmem:[#allocation8 + $0x18] sm:$0xff]  }
 0x34f   : > { %1005 = vadd.xlane.f32.xlu0 %v2713_v29  ;;  %v944_v52 = vpop.xlane.xlu1 %943 }
 0x350   : > { %2031 = vpow2.f32 %v987_v30  ;;  %v960_v18 = vsub.f32 %v2676_v37, %v944_v52  ;;  %v2002_v52 = vld [vmem:[#allocation8 + $0x10] sm:$0xff]  }
 0x351   : > { %v2718_v20 = vpop.eup %2019  ;;  %2033 = vpow2.f32 %v989_v46 }
 0x352   : > { %v2720_v36 = vpop.eup %2021  ;;  %v991_v35 = vmul.f32 1.442695, %v960_v18  ;;  %1007 = vadd.xlane.f32.xlu1 %v2718_v20 }
 0x353   : > { %1009 = vadd.xlane.f32.xlu0 %v2720_v36 }
 0x354   : > { %2035 = vpow2.f32 %v991_v35 }
 0x355   : > { %v2724_v22 = vpop.eup %2023 }
 0x356   : > { %v2726_v23 = vpop.eup %2025  ;;  %1011 = vadd.xlane.f32.xlu1 %v2724_v22 }
 0x357   : > { %1013 = vadd.xlane.f32.xlu0 %v2726_v23 }
 0x359   : > { %v2730_v37 = vpop.eup %2027 }
 0x35a   : > { %v2732_v56 = vpop.eup %2029  ;;  %1015 = vadd.xlane.f32.xlu1 %v2730_v37 }
 0x35b   : > { %1017 = vadd.xlane.f32.xlu0 %v2732_v56 }
 0x35d   : > { %v2736_v59 = vpop.eup %2031 }
 0x35e   : > { %v2738_v0 = vpop.eup %2033  ;;  %1019 = vadd.xlane.f32.xlu1 %v2736_v59 }
 0x35f   : > { %1021 = vadd.xlane.f32.xlu0 %v2738_v0 }
 0x361   : > { %v2742_v4 = vpop.eup %2035 }
 0x362   : > { %1023 = vadd.xlane.f32.xlu1 %v2742_v4 }
 0x3cb   : > { %v994_v10 = vpop.xlane.xlu0 %993 }
 0x3cc   : > { %2037 = vrcp.f32 %v994_v10 }
 0x3cf   : > { %v996_v15 = vpop.xlane.xlu1 %995  ;;  %v998_v27 = vpop.xlane.xlu0 %997 }
 0x3d0   : > { %2039 = vrcp.f32 %v996_v15  ;;  %v2003_v15 = vld [vmem:[#allocation8 + $0x8] sm:$0xff]  }
 0x3d1   : > { %2041 = vrcp.f32 %v998_v27  ;;  %v2004_v27 = vld [vmem:[#allocation8] sm:$0xff]  }
 0x3d3   : > { %v1000_v32 = vpop.xlane.xlu1 %999  ;;  %v1002_v34 = vpop.xlane.xlu0 %1001 }
 0x3d4   : > { %2043 = vrcp.f32 %v1000_v32 }
 0x3d5   : > { %2045 = vrcp.f32 %v1002_v34 }
 0x3d7   : > { %v1004_v38 = vpop.xlane.xlu1 %1003 }
 0x3d8   : > { %2047 = vrcp.f32 %v1004_v38  ;;  %v1006_v39 = vpop.xlane.xlu0 %1005 }
 0x3d9   : > { %2049 = vrcp.f32 %v1006_v39  ;;  %v2038_v40 = vpop.eup %2037 }
 0x3da   : > { %v1041_v47 = vmul.f32 %v2038_v40, %v2690_v61  ;;  %v1998_v61 = vld [vmem:[#allocation8 + $0x30] sm:$0xff]  }
 0x3db   : > { %v1008_v41 = vpop.xlane.xlu1 %1007 }
 0x3dc   : > { %2051 = vrcp.f32 %v1008_v41  ;;  %v1010_v44 = vpop.xlane.xlu0 %1009 }
 0x3dd   : > { %v2040_v45 = vpop.eup %2039  ;;  %2053 = vrcp.f32 %v1010_v44 }
 0x3de   : > { %v1042_v48 = vmul.f32 %v2040_v45, %v2697_v31  ;;  %v2042_v49 = vpop.eup %2041  ;;  %v1999_v31 = vld [vmem:[#allocation8 + $0x28] sm:$0xff]  }
 0x3df   : > { %v1012_v50 = vpop.xlane.xlu1 %1011  ;;  %v1043_v54 = vmul.f32 %v2042_v49, %v2693_v3 }
 0x3e0   : > { %2055 = vrcp.f32 %v1012_v50  ;;  %v1014_v53 = vpop.xlane.xlu0 %1013  ;;  %v1057_v51 = vpack.c.bf16 %v1042_v48, %v1041_v47 }
 0x3e1   : > { %v2044_v19 = vpop.eup %2043  ;;  %2057 = vrcp.f32 %v1014_v53 }
 0x3e2   : > { %1830 = vmatprep.mubr.bf16.mxu1 %v1057_v51  ;;  %v1044_v55 = vmul.f32 %v2044_v19, %v2701_v12  ;;  %v2046_v57 = vpop.eup %2045 }
 0x3e3   : > { %v1016_v21 = vpop.xlane.xlu1 %1015  ;;  %v1045_v1 = vmul.f32 %v2046_v57, %v2705_v17 }
 0x3e4   : > { %2059 = vrcp.f32 %v1016_v21  ;;  %v1018_v58 = vpop.xlane.xlu0 %1017  ;;  %v1058_v60 = vpack.c.bf16 %v1044_v55, %v1043_v54 }
 0x3e5   : > { %v2048_v24 = vpop.eup %2047  ;;  %2061 = vrcp.f32 %v1018_v58 }
 0x3e6   : > { %1831 = vmatmul.mubr.bf16.vlgmr.msra.gmra.mxu1 %v1058_v60  ;;  %v1046_v2 = vmul.f32 %v2048_v24, %v2711_v43  ;;  %v2050_v63 = vpop.eup %2049 }
 0x3e7   : > { %v1020_v62 = vpop.xlane.xlu1 %1019  ;;  %1847 = vmatpush3.bf16.msra.mxu1 %v1997_v9  ;;  %v1047_v6 = vmul.f32 %v2050_v63, %v2713_v29 }
 0x3e8   : > { %2063 = vrcp.f32 %v1020_v62  ;;  %v1022_v3 = vpop.xlane.xlu0 %1021  ;;  %v1059_v7 = vpack.c.bf16 %v1046_v2, %v1045_v1  ;;  %1848 = vmatprep.subr.bf16.mxu1 %v1998_v61 }
 0x3e9   : > { %v2052_v5 = vpop.eup %2051  ;;  %2065 = vrcp.f32 %v1022_v3 }
 0x3ea   : > { %1834 = vmatprep.mubr.bf16.mxu1 %v1059_v7  ;;  %v1048_v8 = vmul.f32 %v2052_v5, %v2718_v20  ;;  %v2054_v11 = vpop.eup %2053 }
 0x3eb   : > { %v1024_v12 = vpop.xlane.xlu1 %1023  ;;  %1849 = vmatpush3.bf16.msra.mxu1 %v1998_v61  ;;  %v1049_v13 = vmul.f32 %v2054_v11, %v2720_v36  ;;  %v1591_v61 = vld [vmem:[%s2831_s5] ss:$0 sm:$0xff] }
 0x3ec   : > { %2067 = vrcp.f32 %v1024_v12  ;;  %v1060_v16 = vpack.c.bf16 %v1048_v8, %v1047_v6  ;;  %1850 = vmatprep.subr.bf16.mxu1 %v1999_v31 }
 0x3ed   : > { %v2056_v17 = vpop.eup %2055 }
 0x3ee   : > { %1835 = vmatmul.mubr.bf16.gmra.mxu1 %v1060_v16  ;;  %v1050_v25 = vmul.f32 %v2056_v17, %v2724_v22  ;;  %v2058_v26 = vpop.eup %2057 }
 0x3ef   : > { %1851 = vmatpush3.bf16.msra.mxu1 %v1999_v31  ;;  %v1051_v43 = vmul.f32 %v2058_v26, %v2726_v23 }
 0x3f0   : > { %v1061_v33 = vpack.c.bf16 %v1050_v25, %v1049_v13  ;;  %1852 = vmatprep.subr.bf16.mxu1 %v2000_v14 }
 0x3f1   : > { %v2060_v42 = vpop.eup %2059 }
 0x3f2   : > { %1838 = vmatprep.mubr.bf16.mxu1 %v1061_v33  ;;  %v1052_v29 = vmul.f32 %v2060_v42, %v2730_v37  ;;  %v2062_v30 = vpop.eup %2061 }
 0x3f3   : > { %1853 = vmatpush3.bf16.msra.mxu1 %v2000_v14  ;;  %v1053_v20 = vmul.f32 %v2062_v30, %v2732_v56 }
 0x3f4   : > { %v1062_v46 = vpack.c.bf16 %v1052_v29, %v1051_v43  ;;  %1854 = vmatprep.subr.bf16.mxu1 %v2001_v28 }
 0x3f5   : > { %v2064_v18 = vpop.eup %2063 }
 0x3f6   : > { %1839 = vmatmul.mubr.bf16.gmra.mxu1 %v1062_v46  ;;  %v1054_v36 = vmul.f32 %v2064_v18, %v2736_v59  ;;  %v2066_v35 = vpop.eup %2065 }
 0x3f7   : > { %1855 = vmatpush3.bf16.msra.mxu1 %v2001_v28  ;;  %v1055_v23 = vmul.f32 %v2066_v35, %v2738_v0 }
 0x3f8   : > { %v1063_v22 = vpack.c.bf16 %v1054_v36, %v1053_v20  ;;  %1856 = vmatprep.subr.bf16.mxu1 %v2002_v52 }
 0x3f9   : > { %v2068_v9 = vpop.eup %2067 }
 0x3fa   : > { %1842 = vmatprep.mubr.bf16.mxu1 %v1063_v22  ;;  %v1056_v37 = vmul.f32 %v2068_v9, %v2742_v4 }
 0x3fb   : > { %1857 = vmatpush3.bf16.msra.mxu1 %v2002_v52 }
 0x3fc   : > { %v1064_v10 = vpack.c.bf16 %v1056_v37, %v1055_v23  ;;  %1858 = vmatprep.subr.bf16.mxu1 %v2003_v15 }
 0x3fe   : > { %1843 = vmatmul.mubr.bf16.gmra.mxu1 %v1064_v10 }
 0x3ff   : > { %1859 = vmatpush3.bf16.msra.mxu1 %v2003_v15 }
 0x400   : > { %1860 = vmatprep.subr.bf16.mxu1 %v2004_v27 }
 0x403   : > { %1861 = vmatpush3.bf16.msra.mxu1 %v2004_v27 }
 0x4a6   : > { %v1832_v56 = vpop.f32.mrf.mxu1 }
 0x4a8   : > { %v1099_v59 = vpop.f32.mrf.mxu1 }
 0x4aa   : > { %v1833_v32 = vpop.f32.mrf.mxu1 }
 0x4ab   : > { %v1163_v39 = vpack.c.bf16 %v1833_v32, %v1832_v56 }
 0x4ac   : > { %v1102_v34 = vpop.f32.mrf.mxu1 }
 0x4ad   : > { %v1162_v38 = vpack.c.bf16 %v1102_v34, %v1099_v59 }
 0x4ae   : > { %v1836_v40 = vpop.f32.mrf.mxu1 }
 0x4af   : > { %1862 = vmatprep.mubr.bf16.mxu1 %v1162_v38 }
 0x4b0   : > { %v1115_v0 = vpop.f32.mrf.mxu1  ;;  %1863 = vmatmul.mubr.bf16.vlgmr.msra.gmra.mxu1 %v1163_v39 }
 0x4b2   : > { %v1837_v4 = vpop.f32.mrf.mxu1 }
 0x4b3   : > { %v1165_v45 = vpack.c.bf16 %v1837_v4, %v1836_v40 }
 0x4b4   : > { %v1118_v41 = vpop.f32.mrf.mxu1 }
 0x4b5   : > { %v1164_v44 = vpack.c.bf16 %v1118_v41, %v1115_v0 }
 0x4b6   : > { %v1840_v47 = vpop.f32.mrf.mxu1 }
 0x4b7   : > { %1866 = vmatprep.mubr.bf16.mxu1 %v1164_v44 }
 0x4b8   : > { %v1131_v48 = vpop.f32.mrf.mxu1  ;;  %1867 = vmatmul.mubr.bf16.gmra.mxu1 %v1165_v45 }
 0x4ba   : > { %v1841_v49 = vpop.f32.mrf.mxu1 }
 0x4bb   : > { %v1167_v51 = vpack.c.bf16 %v1841_v49, %v1840_v47 }
 0x4bc   : > { %v1134_v50 = vpop.f32.mrf.mxu1 }
 0x4bd   : > { %v1166_v53 = vpack.c.bf16 %v1134_v50, %v1131_v48 }
 0x4be   : > { %v1844_v19 = vpop.f32.mrf.mxu1 }
 0x4bf   : > { %1870 = vmatprep.mubr.bf16.mxu1 %v1166_v53 }
 0x4c0   : > { %v1147_v54 = vpop.f32.mrf.mxu1  ;;  %1871 = vmatmul.mubr.bf16.gmra.mxu1 %v1167_v51 }
 0x4c2   : > { %v1845_v55 = vpop.f32.mrf.mxu1 }
 0x4c3   : > { %v1169_v58 = vpack.c.bf16 %v1845_v55, %v1844_v19 }
 0x4c4   : > { %v1150_v57 = vpop.f32.mrf.mxu1 }
 0x4c5   : > { %v1168_v21 = vpack.c.bf16 %v1150_v57, %v1147_v54 }
 0x4c7   : > { %1874 = vmatprep.mubr.bf16.mxu1 %v1168_v21 }
 0x4c8   : > { %1875 = vmatmul.mubr.bf16.gmra.mxu1 %v1169_v58 }
 0x570   : > { %v1864_v60 = vpop.f32.mrf.mxu1 }
 0x571   : > { %v1284_v2 = vadd.f32 %v1864_v60, %v1591_v61 }
 0x572   : > { %v1275_v24 = vpop.f32.mrf.mxu1 }
 0x573   : > { %v1276_v3 = vadd.f32 %v1591_v61, %v1275_v24 }
 0x574   : > { %v1865_v1 = vpop.f32.mrf.mxu1 }
 0x575   : > { %v1287_v63 = vadd.f32 %v1865_v1, %v1591_v61 }
 0x576   : > { %v1278_v62 = vpop.f32.mrf.mxu1 }
 0x577   : > { %v1647_v7 = vpack.c.bf16 %v1287_v63, %v1284_v2  ;;  %v1279_v31 = vadd.f32 %v1591_v61, %v1278_v62 }
 0x578   : > { %v1868_v5 = vpop.f32.mrf.mxu1 }
 0x579   : > { %1679 = vst [vmem:[%s2766_s10 + $0x8] sm:$0xff] %v1647_v7   ;;  %v1642_v6 = vpack.c.bf16 %v1279_v31, %v1276_v3  ;;  %v1300_v12 = vadd.f32 %v1868_v5, %v1591_v61 }
 0x57a   : > { %v1291_v8 = vpop.f32.mrf.mxu1 }
 0x57b   : > { %1643 = vst [vmem:[%s2766_s10] sm:$0xff] %v1642_v6   ;;  %v1292_v17 = vadd.f32 %v1591_v61, %v1291_v8 }
 0x57c   : > { %v1869_v11 = vpop.f32.mrf.mxu1 }
 0x57d   : > { %v1303_v16 = vadd.f32 %v1869_v11, %v1591_v61 }
 0x57e   : > { %v1294_v14 = vpop.f32.mrf.mxu1 }
 0x57f   : > { %v1657_v13 = vpack.c.bf16 %v1303_v16, %v1300_v12  ;;  %v1295_v25 = vadd.f32 %v1591_v61, %v1294_v14 }
 0x580   : > { %v1872_v26 = vpop.f32.mrf.mxu1 }
 0x581   : > { %1681 = vst [vmem:[%s2766_s10 + $0x18] sm:$0xff] %v1657_v13   ;;  %v1652_v33 = vpack.c.bf16 %v1295_v25, %v1292_v17  ;;  %v1316_v43 = vadd.f32 %v1872_v26, %v1591_v61 }
 0x582   : > { %v1307_v28 = vpop.f32.mrf.mxu1 }
 0x583   : > { %1680 = vst [vmem:[%s2766_s10 + $0x10] sm:$0xff] %v1652_v33   ;;  %v1308_v46 = vadd.f32 %v1591_v61, %v1307_v28 }
 0x584   : > { %v1873_v42 = vpop.f32.mrf.mxu1 }
 0x585   : > { %v1319_v29 = vadd.f32 %v1873_v42, %v1591_v61 }
 0x586   : > { %v1310_v30 = vpop.f32.mrf.mxu1 }
 0x587   : > { %v1667_v52 = vpack.c.bf16 %v1319_v29, %v1316_v43  ;;  %v1311_v18 = vadd.f32 %v1591_v61, %v1310_v30 }
 0x588   : > { %v1876_v20 = vpop.f32.mrf.mxu1 }
 0x589   : > { %1683 = vst [vmem:[%s2766_s10 + $0x28] sm:$0xff] %v1667_v52   ;;  %v1662_v36 = vpack.c.bf16 %v1311_v18, %v1308_v46  ;;  %v1332_v9 = vadd.f32 %v1876_v20, %v1591_v61 }
 0x58a   : > { %v1323_v35 = vpop.f32.mrf.mxu1 }
 0x58b   : > { %1682 = vst [vmem:[%s2766_s10 + $0x20] sm:$0xff] %v1662_v36   ;;  %v1324_v10 = vadd.f32 %v1591_v61, %v1323_v35 }
 0x58c   : > { %v1877_v22 = vpop.f32.mrf.mxu1 }
 0x58d   : > { %v1335_v23 = vadd.f32 %v1877_v22, %v1591_v61 }
 0x58e   : > { %v1326_v37 = vpop.f32.mrf.mxu1 }
 0x58f   : > { %v1677_v15 = vpack.c.bf16 %v1335_v23, %v1332_v9  ;;  %v1327_v27 = vadd.f32 %v1591_v61, %v1326_v37 }
 0x591   : > { %1685 = vst [vmem:[%s2766_s10 + $0x38] sm:$0xff] %v1677_v15   ;;  %v1672_v56 = vpack.c.bf16 %v1327_v27, %v1324_v10 }
 0x593   : > { %1684 = vst [vmem:[%s2766_s10 + $0x30] sm:$0xff] %v1672_v56  }
 0x594   : > { %2190 = shalt.err (!%p2187_p7)
}
 0x595   : > { %s2191_s13 = scalar_lea.hbm %s2781_s19, 1024  ;;  %s2195_s29 = scalar_lea.hbm %s2832_s6, 2048 }
 0x596   : > { %p2192_p10 = scmp.ne.s32.totalorder %s2781_s19, %s2191_s13  ;;  %p2196_p11 = scmp.lt.s32.totalorder %s2781_s19, %s2832_s6 }
 0x597   : > { %p2197_p2 = scmp.lt.s32.totalorder %s2195_s29, %s2191_s13 }
 0x598   : > { %p2193_p0 = pnand %p2192_p10, %p2863_p3 }
 0x599   : > { %p2198_p6 = por %p2197_p2, %p2196_p11 }
 0x59a   : > { %p2194_p8 = pneg %p2193_p0 }
 0x59c   : > { %p2199_p12 = pnand %p2198_p6, %p2194_p8 }
 0x59e   : > { %2202 = shalt.err (!%p2199_p12)
}
 0x59f   : > { %s2265_s16 = smov 64   ;;  %s2266_s30 = smov 4  }
 0x5a0   : > { %1890 = dma.vmem_to_hbm [thread:$0]  (%p2863_p3), %s2776_s12, 1024, %s2781_s19, %s1419_s0, %s2265_s16, %s2265_s16, %s2266_s30  }
 0x5a1 PF: > { %s1447_s7 = sand.u32 1, %s2241_s21   ;;  %p2864_p9 = scmp.ne.s32.totalorder %s2844_s28, 0 }
 0x5a2   : > { %p2865_p13 = scmp.ge.s32.totalorder %s2253_s24, 2  ;;  %s1448_s10 = scalar_lea.sflag [#allocation4], %s1447_s7 }
 0x5a4   : > { %p1907_p5 = pnand %p2865_p13, %p2864_p9 }
 0x5a6   : > { %p1908_p1 = pneg %p1907_p5 }
 0x5a8   : > { %2236 = dma.done.wait (%p1908_p1), %s1448_s10, 1024  }
 0x5a9   : > { %2238 = vsyncadd (%p1908_p1), %s1448_s10, 4294966272  ;;  %s2866_s18 = sld [smem:[#allocation16_spill]]  ;;  %p23_p4 = scmp.ge.s32.totalorder %s2377_s26, 4  }
 0x5aa   : > { %s2867_s23 = sld [smem:[#allocation17_spill]]  ;;  %s2868_s21 = smov %s2245_s22 }
 0x5ab   : > { %s2870_s24 = smov %s2377_s26  ;;  %25 = sbr.rel (!%p23_p4) target bundleno = 12 (0xc), region = 110 }
 0x5af   : > { %s2869_s22 = smov %s2866_s18 }
 0x5b0   :  { %1453 = vsyncpa [#allocation3], 1 }
 0x5b1   :  { %1455 = vsyncpa [#allocation3 + $0x1], 1 }
 0x5b2   :  { %1456 = vsyncpa [#allocation6], 1 }
 0x5b3   :  { %1458 = vsyncpa [#allocation6 + $0x1], 1 }
 0x5b4   :  { %1459 = vsyncpa [#allocation9], 1 }
 0x5b5   :  { %1460 = vsyncpa [#allocation4], 1 }
 0x5b6   :  { %1462 = vsyncpa [#allocation4 + $0x1], 1 }

</bundles_post_ra>
